<compile_context>
chip_gen: v7x
topology: tpu7x:2x2x1
jax: 0.10.0
libtpu: 0.0.40
codegen_flags: <defaults>
</compile_context>

<pallas_src>
import jax
import jax.numpy as jnp
from jax.experimental import pallas as pl
from jax.experimental.pallas import tpu as pltpu

_LANE = 128  # TPU lane width / MXU-friendly padding granularity.


def _pad_up(n, m):
    return ((n + m - 1) // m) * m


def _make_kernel(num_actions):
    """Build the fused actor-critic kernel for a static number of actions."""

    def kernel(x_ref,          # [TB, Dp]   f32 (zero-padded features)
               w1_ref, b1_ref,  # [Dp, H1p] bf16, [1, H1p] f32
               w2_ref, b2_ref,  # [H1p, H2p] bf16, [1, H2p] f32
               wh_ref, bh_ref,  # [H2p, NP] bf16, [1, NP] f32  (fused actor+critic head)
               out_ref):        # [TB, NP]  f32 packed: probs in lanes [0,A), value in lane A
        # MXU operands in bf16, accumulation + elementwise in f32.
        x = x_ref[...].astype(jnp.bfloat16)

        h1 = jnp.dot(x, w1_ref[...], preferred_element_type=jnp.float32) + b1_ref[...]
        h1 = jnp.maximum(h1, 0.0)

        h2 = jnp.dot(h1.astype(jnp.bfloat16), w2_ref[...],
                     preferred_element_type=jnp.float32) + b2_ref[...]
        h2 = jnp.maximum(h2, 0.0)

        # Single fused head matmul: lanes [0, A) are actor logits, lane A is the
        # critic value, lanes > A are zero padding.
        head = jnp.dot(h2.astype(jnp.bfloat16), wh_ref[...],
                       preferred_element_type=jnp.float32) + bh_ref[...]

        lane = jax.lax.broadcasted_iota(jnp.int32, head.shape, dimension=1)
        is_action = lane < num_actions
        is_value = lane == num_actions

        # Numerically stable masked softmax over the action lanes.
        neg_inf = jnp.float32(-jnp.inf)
        logits = jnp.where(is_action, head, neg_inf)
        m = jnp.max(logits, axis=-1, keepdims=True)
        e = jnp.where(is_action, jnp.exp(logits - m), 0.0)
        denom = jnp.sum(e, axis=-1, keepdims=True)
        probs = e * pl.reciprocal(denom, approx=True)

        # Pack: probs where action lanes, raw value in its lane, zeros elsewhere.
        packed = jnp.where(is_action, probs, jnp.where(is_value, head, 0.0))
        out_ref[...] = packed.astype(out_ref.dtype)

    return kernel


def actor_critic_forward(x, params, action_space, *, tb=128):
    """Fused actor-critic forward pass.

    x: [B, input_dims] float32 (unpadded).
    params: padded/fused params from init_params.
    Returns (action_probs [B, action_space] f32, value [B, 1] f32).
    """
    B, D = x.shape
    Dp, H1p = params["w1"].shape
    _, H2p = params["w2"].shape
    _, NP = params["wh"].shape

    # Zero-pad batch to a tile multiple and features to the padded width.
    Bp = _pad_up(max(B, 1), tb)
    x_p = jnp.pad(x.astype(jnp.float32), ((0, Bp - B), (0, Dp - D)))

    n_tiles = Bp // tb

    in_specs = [
        pl.BlockSpec((tb, Dp), lambda i: (i, 0)),     # x: tiled over batch
        pl.BlockSpec((Dp, H1p), lambda i: (0, 0)),    # weights/biases resident
        pl.BlockSpec((1, H1p), lambda i: (0, 0)),
        pl.BlockSpec((H1p, H2p), lambda i: (0, 0)),
        pl.BlockSpec((1, H2p), lambda i: (0, 0)),
        pl.BlockSpec((H2p, NP), lambda i: (0, 0)),
        pl.BlockSpec((1, NP), lambda i: (0, 0)),
    ]
    out_specs = pl.BlockSpec((tb, NP), lambda i: (i, 0))

    packed = pl.pallas_call(
        _make_kernel(action_space),
        out_shape=jax.ShapeDtypeStruct((Bp, NP), jnp.float32),
        grid=(n_tiles,),
        in_specs=in_specs,
        out_specs=out_specs,
        compiler_params=pltpu.CompilerParams(
            dimension_semantics=("parallel",)),
    )(x_p,
      params["w1"], params["b1"],
      params["w2"], params["b2"],
      params["wh"], params["bh"])

    probs = packed[:B, :action_space]
    value = packed[:B, action_space:action_space + 1]
    return probs, value


def init_params(key, input_dims, h1, h2, action_space):
    """Deterministic synthetic init (uniform fan-in, like nn.Linear), with the
    actor/critic heads fused and all dims zero-padded to 128 multiples.
    Weights are stored in bf16 (MXU operands); biases in f32."""
    Dp = _pad_up(input_dims, _LANE)
    H1p = _pad_up(h1, _LANE)
    H2p = _pad_up(h2, _LANE)
    NP = _pad_up(action_space + 1, _LANE)

    ks = jax.random.split(key, 8)

    def lin(kw, kb, fan_in, fan_out):
        bound = float(1.0 / (fan_in ** 0.5))
        w = jax.random.uniform(kw, (fan_in, fan_out), jnp.float32, -bound, bound)
        b = jax.random.uniform(kb, (1, fan_out), jnp.float32, -bound, bound)
        return w, b

    w1, b1 = lin(ks[0], ks[1], input_dims, h1)
    w2, b2 = lin(ks[2], ks[3], h1, h2)
    wa, ba = lin(ks[4], ks[5], h2, action_space)   # actor head
    wc, bc = lin(ks[6], ks[7], h2, 1)              # critic head

    # Fuse actor + critic heads into a single [h2, A+1] matmul.
    wh = jnp.concatenate([wa, wc], axis=1)
    bh = jnp.concatenate([ba, bc], axis=1)

    def pad2(a, rows, cols):
        return jnp.pad(a, ((0, rows - a.shape[0]), (0, cols - a.shape[1])))

    return {
        "w1": pad2(w1, Dp, H1p).astype(jnp.bfloat16),
        "b1": pad2(b1, 1, H1p),
        "w2": pad2(w2, H1p, H2p).astype(jnp.bfloat16),
        "b2": pad2(b2, 1, H2p),
        "wh": pad2(wh, H2p, NP).astype(jnp.bfloat16),
        "bh": pad2(bh, 1, NP),
    }


def _reference(x, params, action_space):
    """Pure-JAX f32 reference using the same (bf16-stored) padded params."""
    Dp = params["w1"].shape[0]
    xp = jnp.pad(x.astype(jnp.float32), ((0, 0), (0, Dp - x.shape[1])))
    h1 = jnp.maximum(xp @ params["w1"].astype(jnp.float32) + params["b1"], 0.0)
    h2 = jnp.maximum(h1 @ params["w2"].astype(jnp.float32) + params["b2"], 0.0)
    head = h2 @ params["wh"].astype(jnp.float32) + params["bh"]
    probs = jax.nn.softmax(head[:, :action_space], axis=-1)
    value = head[:, action_space:action_space + 1]
    return probs, value


if __name__ == "__main__":
    key = jax.random.PRNGKey(0)
    k_x, k_p = jax.random.split(key)

    # Small shapes consistent with the module signature:
    # input_dims=16 observation, network_dims=(32, 32) hidden, action_space=4.
    B, input_dims, H1, H2, action_space = 2, 16, 32, 32, 4

    x = jax.random.normal(k_x, (B, input_dims), jnp.float32)
    params = init_params(k_p, input_dims, H1, H2, action_space)

    probs, value = actor_critic_forward(x, params, action_space)
    jax.block_until_ready((probs, value))

    # Sanity checks: shapes, finiteness, softmax normalization, loose numeric
    # agreement with a pure-JAX f32 reference (kernel uses bf16 MXU operands).
    assert probs.shape == (B, action_space)
    assert value.shape == (B, 1)
    assert bool(jnp.all(jnp.isfinite(probs))) and bool(jnp.all(jnp.isfinite(value)))
    assert jnp.allclose(jnp.sum(probs, axis=-1), 1.0, atol=5e-3)

    ref_probs, ref_value = _reference(x, params, action_space)
    assert jnp.allclose(probs, ref_probs, atol=5e-2, rtol=5e-2)
    assert jnp.allclose(value, ref_value, atol=5e-2, rtol=5e-2)

    print("KERNEL_OK")
</pallas_src>

<mosaic_0001>
module attributes {stable_mosaic.version = 11 : i64} {
  func.func @kernel(%arg0: i32, %arg1: memref<128x128xf32, #tpu.memory_space<vmem>>, %arg2: memref<128x128xbf16, #tpu.memory_space<vmem>>, %arg3: memref<1x128xf32, #tpu.memory_space<vmem>>, %arg4: memref<128x128xbf16, #tpu.memory_space<vmem>>, %arg5: memref<1x128xf32, #tpu.memory_space<vmem>>, %arg6: memref<128x128xbf16, #tpu.memory_space<vmem>>, %arg7: memref<1x128xf32, #tpu.memory_space<vmem>>, %arg8: memref<128x128xf32, #tpu.memory_space<vmem>>) attributes {dimension_semantics = [#tpu.dimension_semantics<parallel>], iteration_bounds = array<i64: 1>, scalar_prefetch = 0 : i64, scratch_operands = 0 : i64, tpu.core_type = #tpu.core_type<tc>, window_params = [{transform_indices = @transform_0, window_bounds = array<i64: 128, 128>}, {pipeline_mode = #tpu.pipeline_mode<synchronous>, transform_indices = @transform_1, window_bounds = array<i64: 128, 128>}, {pipeline_mode = #tpu.pipeline_mode<synchronous>, transform_indices = @transform_2, window_bounds = array<i64: 1, 128>}, {pipeline_mode = #tpu.pipeline_mode<synchronous>, transform_indices = @transform_3, window_bounds = array<i64: 128, 128>}, {pipeline_mode = #tpu.pipeline_mode<synchronous>, transform_indices = @transform_4, window_bounds = array<i64: 1, 128>}, {pipeline_mode = #tpu.pipeline_mode<synchronous>, transform_indices = @transform_5, window_bounds = array<i64: 128, 128>}, {pipeline_mode = #tpu.pipeline_mode<synchronous>, transform_indices = @transform_6, window_bounds = array<i64: 1, 128>}, {transform_indices = @transform_7, window_bounds = array<i64: 128, 128>}]} {
    %c0 = arith.constant 0 : index
    %c0_0 = arith.constant 0 : index
    %0 = vector.load %arg1[%c0, %c0_0] : memref<128x128xf32, #tpu.memory_space<vmem>>, vector<128x128xf32>
    %1 = arith.truncf %0 : vector<128x128xf32> to vector<128x128xbf16>
    %c0_1 = arith.constant 0 : index
    %c0_2 = arith.constant 0 : index
    %2 = vector.load %arg2[%c0_1, %c0_2] : memref<128x128xbf16, #tpu.memory_space<vmem>>, vector<128x128xbf16>
    %cst = arith.constant dense<0.000000e+00> : vector<128x128xf32>
    %3 = tpu.matmul %1, %2, %cst {dimension_numbers = #tpu.dot_dimension_numbers<[1], [0], [0], [1], [0, 0, 1, 1], [], []>} : vector<128x128xbf16>, vector<128x128xbf16>, vector<128x128xf32> -> vector<128x128xf32>
    %c0_3 = arith.constant 0 : index
    %c0_4 = arith.constant 0 : index
    %4 = vector.load %arg3[%c0_3, %c0_4] : memref<1x128xf32, #tpu.memory_space<vmem>>, vector<1x128xf32>
    %5 = vector.broadcast %4 : vector<1x128xf32> to vector<128x128xf32>
    %6 = arith.addf %3, %5 : vector<128x128xf32>
    %cst_5 = arith.constant 0.000000e+00 : f32
    %7 = vector.broadcast %cst_5 : f32 to vector<128x128xf32>
    %8 = arith.maximumf %6, %7 : vector<128x128xf32>
    %9 = arith.truncf %8 : vector<128x128xf32> to vector<128x128xbf16>
    %c0_6 = arith.constant 0 : index
    %c0_7 = arith.constant 0 : index
    %10 = vector.load %arg4[%c0_6, %c0_7] : memref<128x128xbf16, #tpu.memory_space<vmem>>, vector<128x128xbf16>
    %cst_8 = arith.constant dense<0.000000e+00> : vector<128x128xf32>
    %11 = tpu.matmul %9, %10, %cst_8 {dimension_numbers = #tpu.dot_dimension_numbers<[1], [0], [0], [1], [0, 0, 1, 1], [], []>} : vector<128x128xbf16>, vector<128x128xbf16>, vector<128x128xf32> -> vector<128x128xf32>
    %c0_9 = arith.constant 0 : index
    %c0_10 = arith.constant 0 : index
    %12 = vector.load %arg5[%c0_9, %c0_10] : memref<1x128xf32, #tpu.memory_space<vmem>>, vector<1x128xf32>
    %13 = vector.broadcast %12 : vector<1x128xf32> to vector<128x128xf32>
    %14 = arith.addf %11, %13 : vector<128x128xf32>
    %cst_11 = arith.constant 0.000000e+00 : f32
    %15 = vector.broadcast %cst_11 : f32 to vector<128x128xf32>
    %16 = arith.maximumf %14, %15 : vector<128x128xf32>
    %17 = arith.truncf %16 : vector<128x128xf32> to vector<128x128xbf16>
    %c0_12 = arith.constant 0 : index
    %c0_13 = arith.constant 0 : index
    %18 = vector.load %arg6[%c0_12, %c0_13] : memref<128x128xbf16, #tpu.memory_space<vmem>>, vector<128x128xbf16>
    %cst_14 = arith.constant dense<0.000000e+00> : vector<128x128xf32>
    %19 = tpu.matmul %17, %18, %cst_14 {dimension_numbers = #tpu.dot_dimension_numbers<[1], [0], [0], [1], [0, 0, 1, 1], [], []>} : vector<128x128xbf16>, vector<128x128xbf16>, vector<128x128xf32> -> vector<128x128xf32>
    %c0_15 = arith.constant 0 : index
    %c0_16 = arith.constant 0 : index
    %20 = vector.load %arg7[%c0_15, %c0_16] : memref<1x128xf32, #tpu.memory_space<vmem>>, vector<1x128xf32>
    %21 = vector.broadcast %20 : vector<1x128xf32> to vector<128x128xf32>
    %22 = arith.addf %19, %21 : vector<128x128xf32>
    %23 = tpu.iota {dimensions = array<i32: 1>} : vector<128x128xi32>
    %c4_i32 = arith.constant 4 : i32
    %24 = vector.broadcast %c4_i32 : i32 to vector<128x128xi32>
    %25 = arith.cmpi slt, %23, %24 : vector<128x128xi32>
    %c4_i32_17 = arith.constant 4 : i32
    %26 = vector.broadcast %c4_i32_17 : i32 to vector<128x128xi32>
    %27 = arith.cmpi eq, %23, %26 : vector<128x128xi32>
    %cst_18 = arith.constant 0xFF800000 : f32
    %28 = vector.broadcast %cst_18 : f32 to vector<128x128xf32>
    %29 = arith.select %25, %22, %28 : vector<128x128xi1>, vector<128x128xf32>
    %cst_19 = arith.constant dense<0xFF800000> : vector<128xf32>
    %30 = vector.multi_reduction <maximumf>, %29, %cst_19 [1] : vector<128x128xf32> to vector<128xf32>
    %31 = vector.shape_cast %30 : vector<128xf32> to vector<128x1xf32>
    %32 = vector.broadcast %31 : vector<128x1xf32> to vector<128x128xf32>
    %33 = arith.subf %29, %32 : vector<128x128xf32>
    %34 = math.exp %33 : vector<128x128xf32>
    %cst_20 = arith.constant 0.000000e+00 : f32
    %35 = vector.broadcast %cst_20 : f32 to vector<128x128xf32>
    %36 = arith.select %25, %34, %35 : vector<128x128xi1>, vector<128x128xf32>
    %cst_21 = arith.constant dense<0.000000e+00> : vector<128xf32>
    %37 = vector.multi_reduction <add>, %36, %cst_21 [1] : vector<128x128xf32> to vector<128xf32>
    %38 = vector.shape_cast %37 : vector<128xf32> to vector<128x1xf32>
    %39 = tpu.reciprocal %38 {approx = true} : vector<128x1xf32> -> vector<128x1xf32>
    %40 = vector.broadcast %39 : vector<128x1xf32> to vector<128x128xf32>
    %41 = arith.mulf %36, %40 : vector<128x128xf32>
    %cst_22 = arith.constant 0.000000e+00 : f32
    %42 = vector.broadcast %cst_22 : f32 to vector<128x128xf32>
    %43 = arith.select %27, %22, %42 : vector<128x128xi1>, vector<128x128xf32>
    %44 = arith.select %25, %41, %43 : vector<128x128xi1>, vector<128x128xf32>
    %c0_23 = arith.constant 0 : index
    %c0_24 = arith.constant 0 : index
    %45 = vector.load %arg8[%c0_23, %c0_24] : memref<128x128xf32, #tpu.memory_space<vmem>>, vector<128x128xf32>
    tpu.vector_store %arg8[%c0_23, %c0_24], %44 {strides = array<i32>} : memref<128x128xf32, #tpu.memory_space<vmem>>, vector<128x128xf32>,
    return
  }
  func.func @transform_0(%arg0: i32) -> (i32, i32) {
    %c0_i32 = arith.constant 0 : i32
    %c0_i32_0 = arith.constant 0 : i32
    return %arg0, %c0_i32 : i32, i32
  }
  func.func @transform_1(%arg0: i32) -> (i32, i32) {
    %c0_i32 = arith.constant 0 : i32
    %c0_i32_0 = arith.constant 0 : i32
    %c0_i32_1 = arith.constant 0 : i32
    return %c0_i32, %c0_i32_0 : i32, i32
  }
  func.func @transform_2(%arg0: i32) -> (i32, i32) {
    %c0_i32 = arith.constant 0 : i32
    %c0_i32_0 = arith.constant 0 : i32
    %c0_i32_1 = arith.constant 0 : i32
    return %c0_i32, %c0_i32_0 : i32, i32
  }
  func.func @transform_3(%arg0: i32) -> (i32, i32) {
    %c0_i32 = arith.constant 0 : i32
    %c0_i32_0 = arith.constant 0 : i32
    %c0_i32_1 = arith.constant 0 : i32
    return %c0_i32, %c0_i32_0 : i32, i32
  }
  func.func @transform_4(%arg0: i32) -> (i32, i32) {
    %c0_i32 = arith.constant 0 : i32
    %c0_i32_0 = arith.constant 0 : i32
    %c0_i32_1 = arith.constant 0 : i32
    return %c0_i32, %c0_i32_0 : i32, i32
  }
  func.func @transform_5(%arg0: i32) -> (i32, i32) {
    %c0_i32 = arith.constant 0 : i32
    %c0_i32_0 = arith.constant 0 : i32
    %c0_i32_1 = arith.constant 0 : i32
    return %c0_i32, %c0_i32_0 : i32, i32
  }
  func.func @transform_6(%arg0: i32) -> (i32, i32) {
    %c0_i32 = arith.constant 0 : i32
    %c0_i32_0 = arith.constant 0 : i32
    %c0_i32_1 = arith.constant 0 : i32
    return %c0_i32, %c0_i32_0 : i32, i32
  }
  func.func @transform_7(%arg0: i32) -> (i32, i32) {
    %c0_i32 = arith.constant 0 : i32
    %c0_i32_0 = arith.constant 0 : i32
    return %arg0, %c0_i32 : i32, i32
  }
}

</mosaic_0001>

<bundles_post_ra>
// kernel: tpu_custom_call.1
= control target key start
LH: loop header
LB: loop body
LE: loop exit
PB: predicated region body
PF: predicated region fallthrough
CT: control target
= control target key end

     0   :  { %12 = vsyncpa [#allocation3], 0  ;;  %s1810_s0 = inlined_call_operand.hbm [shape: f32[128,128], index: 0, kind: input, shape index: {}]   ;;  %s1811_s1 = inlined_call_operand.hbm [shape: bf16[128,128], index: 1, kind: input, shape index: {}]   ;;  %s1812_s2 = inlined_call_operand.vmem [shape: f32[1,128], index: 2, kind: input, shape index: {}]   ;;  %s1813_s3 = inlined_call_operand.hbm [shape: bf16[128,128], index: 3, kind: input, shape index: {}]   ;;  %s1814_s4 = inlined_call_operand.vmem [shape: f32[1,128], index: 4, kind: input, shape index: {}]   ;;  %s1815_s5 = inlined_call_operand.hbm [shape: bf16[128,128], index: 5, kind: input, shape index: {}]   ;;  %s1816_s6 = inlined_call_operand.vmem [shape: f32[1,128], index: 6, kind: input, shape index: {}]   ;;  %s1817_s7 = inlined_call_operand.hbm [shape: f32[128,128], index: 7, kind: output, shape index: {}]  }
   0x1   :  { %13 = vsyncpa [#allocation6], 0 }
   0x2   :  { %14 = vsyncpa [#allocation9], 0 }
   0x3   :  { %15 = vsyncpa [#allocation4], 0  ;;  %s1308_s24 = smov [#allocation5]   ;;  %s1190_s28 = scalar_lea.hbm %s1811_s1, 1024 }
   0x4   :  { %s33_s25 = sshll.u32 %s1308_s24, 4  ;;  %p1191_p0 = scmp.ne.s32.totalorder %s1811_s1, %s1190_s28  ;;  %s34_s25 = int_to_ptr.vmem [resolvable:$true] %s33_s25 }
   0x5   :  { %p1194_p1 = scmp.lt.u32.totalorder %s1190_s28, %s1811_s1 }
   0x7   :  { %p1196_p2 = pnand %p1194_p1, %p1191_p0 }
   0x9   :  { %1199 = shalt.err (!%p1196_p2)
}
   0xa   :  { %s1200_s10 = scalar_lea.vmem %s34_s25, 1024  ;;  %p1205_p4 = scmp.lt.s32.totalorder %s34_s25, %s34_s25 }
   0xb   :  { %p1201_p3 = scmp.ne.s32.totalorder %s34_s25, %s1200_s10  ;;  %p1206_p5 = scmp.lt.s32.totalorder %s1200_s10, %s1200_s10 }
   0xd   :  { %p1207_p6 = por %p1206_p5, %p1205_p4 }
   0xf   :  { %p1208_p7 = pnand %p1207_p6, %p1201_p3 }
  0x11   :  { %1211 = shalt.err (!%p1208_p7)
}
  0x12   :  { %s1309_s11 = smov 64   ;;  %s1310_s12 = smov 4  }
  0x13   :  { %39 = dma.hbm_to_vmem [thread:$0]  %s1811_s1, 1024, %s34_s25, [#allocation6], %s1309_s11, %s1309_s11, %s1310_s12  }
  0x14   :  { %s1311_s15 = smov [#allocation2]   ;;  %s1212_s19 = scalar_lea.hbm %s1810_s0, 2048 }
  0x15   :  { %s21_s16 = sshll.u32 %s1311_s15, 4  ;;  %p1213_p8 = scmp.ne.s32.totalorder %s1810_s0, %s1212_s19  ;;  %s22_s16 = int_to_ptr.vmem [resolvable:$true] %s21_s16 }
  0x16   :  { %p1216_p9 = scmp.lt.u32.totalorder %s1212_s19, %s1810_s0 }
  0x18   :  { %p1218_p10 = pnand %p1216_p9, %p1213_p8 }
  0x1a   :  { %1221 = shalt.err (!%p1218_p10)
}
  0x1b   :  { %s1222_s24 = scalar_lea.vmem %s22_s16, 2048  ;;  %p1227_p12 = scmp.lt.s32.totalorder %s22_s16, %s22_s16 }
  0x1c   :  { %p1223_p11 = scmp.ne.s32.totalorder %s22_s16, %s1222_s24  ;;  %p1228_p13 = scmp.lt.s32.totalorder %s1222_s24, %s1222_s24 }
  0x1e   :  { %p1229_p0 = por %p1228_p13, %p1227_p12 }
  0x20   :  { %p1230_p1 = pnand %p1229_p0, %p1223_p11 }
  0x22   :  { %1233 = shalt.err (!%p1230_p1)
}
  0x23   :  { %s1312_s1 = smov 128   ;;  %s1313_s25 = smov 8  }
  0x24   :  { %27 = dma.hbm_to_vmem [thread:$0]  %s1810_s0, 2048, %s22_s16, [#allocation3], %s1312_s1, %s1312_s1, %s1313_s25  }
  0x25   :  { %s1314_s28 = smov [#allocation7]   ;;  %s1315_s30 = smov [#allocation8]  }
  0x26   :  { %s47_s29 = sshll.u32 %s1314_s28, 4  ;;  %s61_s8 = sshll.u32 %s1315_s30, 4  ;;  %s48_s29 = int_to_ptr.vmem [resolvable:$true] %s47_s29  ;;  %s1387_s8 = int_to_ptr.vmem [resolvable:$true] %s61_s8 }
  0x27   :  { %s1234_s13 = scalar_lea.hbm %s1813_s3, 1024 }
  0x28   :  { %p1235_p2 = scmp.ne.s32.totalorder %s1813_s3, %s1234_s13  ;;  %p1238_p3 = scmp.lt.u32.totalorder %s1234_s13, %s1813_s3 }
  0x2a   :  { %p1240_p4 = pnand %p1238_p3, %p1235_p2 }
  0x2c   :  { %1243 = shalt.err (!%p1240_p4)
}
  0x2d   :  { %s1244_s0 = scalar_lea.vmem %s48_s29, 1024  ;;  %p1249_p6 = scmp.lt.s32.totalorder %s48_s29, %s48_s29 }
  0x2e   :  { %p1245_p5 = scmp.ne.s32.totalorder %s48_s29, %s1244_s0  ;;  %p1250_p7 = scmp.lt.s32.totalorder %s1244_s0, %s1244_s0 }
  0x30   :  { %p1251_p8 = por %p1250_p7, %p1249_p6 }
  0x32   :  { %p1252_p9 = pnand %p1251_p8, %p1245_p5 }
  0x34   :  { %1255 = shalt.err (!%p1252_p9)
}
  0x35   :  { %53 = dma.hbm_to_vmem [thread:$0]  %s1813_s3, 1024, %s48_s29, [#allocation6], %s1309_s11, %s1309_s11, %s1310_s12  }
  0x36   :  { %s1256_s22 = scalar_lea.hbm %s1815_s5, 1024 }
  0x37   :  { %p1257_p10 = scmp.ne.s32.totalorder %s1815_s5, %s1256_s22  ;;  %p1260_p11 = scmp.lt.u32.totalorder %s1256_s22, %s1815_s5 }
  0x39   :  { %p1262_p12 = pnand %p1260_p11, %p1257_p10 }
  0x3b   :  { %1265 = shalt.err (!%p1262_p12)
}
  0x3c   :  { %s1266_s28 = scalar_lea.vmem %s1387_s8, 1024  ;;  %p1271_p0 = scmp.lt.s32.totalorder %s1387_s8, %s1387_s8 }
  0x3d   :  { %p1267_p13 = scmp.ne.s32.totalorder %s1387_s8, %s1266_s28  ;;  %p1272_p1 = scmp.lt.s32.totalorder %s1266_s28, %s1266_s28 }
  0x3f   :  { %p1273_p2 = por %p1272_p1, %p1271_p0 }
  0x41   :  { %p1274_p3 = pnand %p1273_p2, %p1267_p13 }
  0x43   :  { %1277 = shalt.err (!%p1274_p3)
}
  0x44   :  { %67 = dma.hbm_to_vmem [thread:$0]  %s1815_s5, 1024, %s1387_s8, [#allocation9], %s1309_s11, %s1309_s11, %s1310_s12  }
  0x45   :  { %1300 = dma.done.wait [#allocation3], 2048  }
  0x46   :  { %1301 = vsyncadd [#allocation3], 4294965248 }
  0x47   :  { %1302 = dma.done.wait [#allocation6], 2048  }
  0x48   :  { %1303 = vsyncadd [#allocation6], 4294965248 }
  0x49   :  { %1304 = dma.done.wait [#allocation9], 1024  }
  0x4a   :  { %1305 = vsyncadd [#allocation9], 4294966272  ;;  %v1102_v0 = vld [vmem:[#allocation5] sm:$0xff]   ;;  %v1103_v1 = vld [vmem:[#allocation5 + $0x8] sm:$0xff]  }
  0x4b   :  { %981 = vmatprep.subr.bf16.mxu0 %v1102_v0  ;;  %v1104_v2 = vld [vmem:[#allocation5 + $0x10] sm:$0xff]   ;;  %v1105_v3 = vld [vmem:[#allocation5 + $0x18] sm:$0xff]   ;;  %v83_v4 = vld [vmem:[#allocation2] sm:$0xff] }
  0x4c   :  { %982 = vmatpush3.bf16.msra.mxu0 %v1102_v0  ;;  %v84_v5 = vld [vmem:[#allocation2 + $0x8] sm:$0xff]  ;;  %v1106_v7 = vld [vmem:[#allocation5 + $0x20] sm:$0xff]   ;;  %v1112_v11 = vld [vmem:[#allocation7 + $0x10] sm:$0xff]  }
  0x4d   :  { %983 = vmatprep.subr.bf16.mxu0 %v1103_v1  ;;  %v99_v6 = vpack.c.bf16 %v84_v5, %v83_v4  ;;  %v1110_v8 = vld [vmem:[#allocation7] sm:$0xff]   ;;  %v1111_v9 = vld [vmem:[#allocation7 + $0x8] sm:$0xff]   ;;  %v1108_v12 = vld [vmem:[#allocation5 + $0x30] sm:$0xff]  }
  0x4e   :  { %v1107_v10 = vld [vmem:[#allocation5 + $0x28] sm:$0xff]   ;;  %1013 = vmatprep.subr.bf16.mxu1 %v1110_v8  ;;  %v1113_v13 = vld [vmem:[#allocation7 + $0x18] sm:$0xff]   ;;  %v1114_v15 = vld [vmem:[#allocation7 + $0x20] sm:$0xff]  }
  0x4f   :  { %997 = vmatprep.mubr.bf16.mxu0 %v99_v6  ;;  %1014 = vmatpush3.bf16.msra.mxu1 %v1110_v8  ;;  %v1109_v14 = vld [vmem:[#allocation5 + $0x38] sm:$0xff]   ;;  %v85_v16 = vld [vmem:[#allocation2 + $0x10] sm:$0xff]  ;;  %v87_v18 = vld [vmem:[#allocation2 + $0x20] sm:$0xff] }
  0x50   :  { %984 = vmatpush3.bf16.msra.mxu0 %v1103_v1  ;;  %1015 = vmatprep.subr.bf16.mxu1 %v1111_v9  ;;  %v86_v17 = vld [vmem:[#allocation2 + $0x18] sm:$0xff]  ;;  %v88_v19 = vld [vmem:[#allocation2 + $0x28] sm:$0xff]  ;;  %v89_v23 = vld [vmem:[#allocation2 + $0x30] sm:$0xff] }
  0x51   :  { %985 = vmatprep.subr.bf16.mxu0 %v1104_v2  ;;  %v100_v20 = vpack.c.bf16 %v86_v17, %v85_v16  ;;  %v1115_v21 = vld [vmem:[#allocation7 + $0x28] sm:$0xff]   ;;  %v101_v22 = vpack.c.bf16 %v88_v19, %v87_v18  ;;  %v90_v24 = vld [vmem:[#allocation2 + $0x38] sm:$0xff]  ;;  %v91_v25 = vld [vmem:[#allocation2 + $0x40] sm:$0xff] }
  0x52   :  { %v92_v26 = vld [vmem:[#allocation2 + $0x48] sm:$0xff]  ;;  %v102_v27 = vpack.c.bf16 %v90_v24, %v89_v23  ;;  %v93_v29 = vld [vmem:[#allocation2 + $0x50] sm:$0xff]  ;;  %v94_v30 = vld [vmem:[#allocation2 + $0x58] sm:$0xff] }
  0x53   :  { %1016 = vmatpush3.bf16.msra.mxu1 %v1111_v9  ;;  %v103_v28 = vpack.c.bf16 %v92_v26, %v91_v25  ;;  %v95_v31 = vld [vmem:[#allocation2 + $0x60] sm:$0xff]  ;;  %v96_v32 = vld [vmem:[#allocation2 + $0x68] sm:$0xff]  ;;  %v104_v33 = vpack.c.bf16 %v94_v30, %v93_v29  ;;  %v97_v35 = vld [vmem:[#allocation2 + $0x70] sm:$0xff] }
  0x54   :  { %986 = vmatpush3.bf16.msra.mxu0 %v1104_v2  ;;  %1017 = vmatprep.subr.bf16.mxu1 %v1112_v11  ;;  %v105_v34 = vpack.c.bf16 %v96_v32, %v95_v31  ;;  %v98_v36 = vld [vmem:[#allocation2 + $0x78] sm:$0xff]  ;;  %v1116_v38 = vld [vmem:[#allocation7 + $0x30] sm:$0xff]   ;;  %v1118_v40 = vld [vmem:[#allocation8] sm:$0xff]  }
  0x55   :  { %987 = vmatprep.subr.bf16.mxu0 %v1105_v3  ;;  %v106_v37 = vpack.c.bf16 %v98_v36, %v97_v35  ;;  %v1117_v39 = vld [vmem:[#allocation7 + $0x38] sm:$0xff]   ;;  %v1119_v41 = vld [vmem:[#allocation8 + $0x8] sm:$0xff]   ;;  %v1120_v42 = vld [vmem:[#allocation8 + $0x10] sm:$0xff]  }
  0x56   :  { %v1424_v43 = vld [vmem:[#allocation8 + $0x18] sm:$0xff]   ;;  %v1427_v44 = vld [vmem:[#allocation8 + $0x20] sm:$0xff]   ;;  %v1431_v45 = vld [vmem:[#allocation8 + $0x28] sm:$0xff]  }
  0x57   :  { %1018 = vmatpush3.bf16.msra.mxu1 %v1112_v11  ;;  %v1439_v46 = vld [vmem:[%s1812_s2] ss:$0 sm:$0xff] }
  0x58   :  { %988 = vmatpush3.bf16.msra.mxu0 %v1105_v3  ;;  %1019 = vmatprep.subr.bf16.mxu1 %v1113_v13 }
  0x59   :  { %989 = vmatprep.subr.bf16.mxu0 %v1106_v7 }
  0x5b   :  { %1020 = vmatpush3.bf16.msra.mxu1 %v1113_v13 }
  0x5c   :  { %990 = vmatpush3.bf16.msra.mxu0 %v1106_v7  ;;  %1021 = vmatprep.subr.bf16.mxu1 %v1114_v15 }
  0x5d   :  { %991 = vmatprep.subr.bf16.mxu0 %v1107_v10 }
  0x5f   :  { %1022 = vmatpush3.bf16.msra.mxu1 %v1114_v15 }
  0x60   :  { %992 = vmatpush3.bf16.msra.mxu0 %v1107_v10  ;;  %1023 = vmatprep.subr.bf16.mxu1 %v1115_v21 }
  0x61   :  { %993 = vmatprep.subr.bf16.mxu0 %v1108_v12 }
  0x63   :  { %1024 = vmatpush3.bf16.msra.mxu1 %v1115_v21 }
  0x64   :  { %994 = vmatpush3.bf16.msra.mxu0 %v1108_v12  ;;  %1025 = vmatprep.subr.bf16.mxu1 %v1116_v38 }
  0x65   :  { %995 = vmatprep.subr.bf16.mxu0 %v1109_v14 }
  0x67   :  { %1026 = vmatpush3.bf16.msra.mxu1 %v1116_v38 }
  0x68   :  { %996 = vmatpush3.bf16.msra.mxu0 %v1109_v14  ;;  %1027 = vmatprep.subr.bf16.mxu1 %v1117_v39 }
  0x69   :  { %1045 = vmatprep.subr.bf16.mxu0 %v1118_v40 }
  0x6b   :  { %998 = vmatmul.mubr.bf16.vlgmr.msra.gmra.mrb[0].mxu0 %v100_v20  ;;  %1028 = vmatpush3.bf16.msra.mxu1 %v1117_v39  ;;  %v1124_v39 = vld [vmem:[#allocation8 + $0x30] sm:$0xff]  }
  0x6c   :  { %1001 = vmatprep.mubr.bf16.mxu0 %v101_v22  ;;  %1077 = vmatprep.subr.bf16.mxu1 %v1118_v40 }
  0x6d   :  { %1046 = vmatpush3.bf16.msra.mxu0 %v1118_v40 }
  0x6e   :  { %1047 = vmatprep.subr.bf16.mxu0 %v1119_v41 }
  0x71   :  { %1048 = vmatpush3.bf16.msra.mxu0 %v1119_v41 }
  0x72   :  { %1049 = vmatprep.subr.bf16.mxu0 %v1120_v42 }
  0x73   :  { %1002 = vmatmul.mubr.bf16.gmra.mrb[4].mxu0 %v102_v27 }
  0x74   :  { %1005 = vmatprep.mubr.bf16.mxu0 %v103_v28 }
  0x75   :  { %1050 = vmatpush3.bf16.msra.mxu0 %v1120_v42 }
  0x76   :  { %1051 = vmatprep.subr.bf16.mxu0 %v1424_v43 }
  0x79   :  { %1052 = vmatpush3.bf16.msra.mxu0 %v1424_v43 }
  0x7a   :  { %1053 = vmatprep.subr.bf16.mxu0 %v1427_v44 }
  0x7b   :  { %1006 = vmatmul.mubr.bf16.gmra.mrb[8].mxu0 %v104_v33 }
  0x7c   :  { %1009 = vmatprep.mubr.bf16.mxu0 %v105_v34 }
  0x7d   :  { %1054 = vmatpush3.bf16.msra.mxu0 %v1427_v44 }
  0x7e   :  { %1055 = vmatprep.subr.bf16.mxu0 %v1431_v45 }
  0x81   :  { %1056 = vmatpush3.bf16.msra.mxu0 %v1431_v45 }
  0x82   :  { %1057 = vmatprep.subr.bf16.mxu0 %v1124_v39 }
  0x83   :  { %1010 = vmatmul.mubr.bf16.gmra.mrb[12].mxu0 %v106_v37 }
  0x85   :  { %1058 = vmatpush3.bf16.msra.mxu0 %v1124_v39 }
 0x13e   :  { %v999_v47 = vpop.f32.mrb[0].mxu0 }
 0x13f   :  { %v221_v48 = vadd.f32 %v999_v47, %v1439_v46  ;;  %v212_v49 = vpop.f32.mrb[1].mxu0 }
 0x140   :  { %v213_v50 = vadd.f32 %v1439_v46, %v212_v49  ;;  %v1000_v51 = vpop.f32.mrb[2].mxu0 }
 0x141   :  { %v224_v52 = vadd.f32 %v1000_v51, %v1439_v46  ;;  %v215_v53 = vpop.f32.mrb[3].mxu0  ;;  %v277_v55 = vmax.f32 %v221_v48, 0.0 }
 0x142   :  { %v216_v54 = vadd.f32 %v1439_v46, %v215_v53  ;;  %v275_v57 = vmax.f32 %v213_v50, 0.0 }
 0x143   :  { %v278_v56 = vmax.f32 %v224_v52, 0.0 }
 0x144   :  { %v276_v58 = vmax.f32 %v216_v54, 0.0 }
 0x145   :  { %v292_v59 = vpack.c.bf16 %v278_v56, %v277_v55 }
 0x146   :  { %v1003_v60 = vpop.f32.mrb[4].mxu0  ;;  %v291_v61 = vpack.c.bf16 %v276_v58, %v275_v57 }
 0x147   :  { %v237_v62 = vadd.f32 %v1003_v60, %v1439_v46  ;;  %v228_v63 = vpop.f32.mrb[5].mxu0 }
 0x148   :  { %v229_v0 = vadd.f32 %v1439_v46, %v228_v63  ;;  %v1004_v1 = vpop.f32.mrb[6].mxu0  ;;  %1029 = vmatprep.mubr.bf16.mxu1 %v291_v61 }
 0x149   :  { %v281_v2 = vmax.f32 %v237_v62, 0.0  ;;  %v240_v3 = vadd.f32 %v1004_v1, %v1439_v46  ;;  %v231_v4 = vpop.f32.mrb[7].mxu0  ;;  %1030 = vmatmul.mubr.bf16.vlgmr.msra.gmra.mrb[0].mxu1 %v292_v59 }
 0x14a   :  { %v232_v5 = vadd.f32 %v1439_v46, %v231_v4  ;;  %1085 = vmatpush3.bf16.msra.mxu1 %v1118_v40  ;;  %v279_v7 = vmax.f32 %v229_v0, 0.0  ;;  %v1125_v40 = vld [vmem:[#allocation8 + $0x38] sm:$0xff]  }
 0x14b   :  { %v282_v6 = vmax.f32 %v240_v3, 0.0  ;;  %1078 = vmatprep.subr.bf16.mxu1 %v1119_v41  ;;  %1059 = vmatprep.subr.bf16.mxu0 %v1125_v40 }
 0x14c   :  { %v280_v8 = vmax.f32 %v232_v5, 0.0  ;;  %1060 = vmatpush3.bf16.msra.mxu0 %v1125_v40 }
 0x14d   :  { %v294_v9 = vpack.c.bf16 %v282_v6, %v281_v2 }
 0x14e   :  { %v293_v10 = vpack.c.bf16 %v280_v8, %v279_v7  ;;  %v1007_v11 = vpop.f32.mrb[8].mxu0  ;;  %1086 = vmatpush3.bf16.msra.mxu1 %v1119_v41  ;;  %v915_v41 = vld [vmem:[%s1814_s4] ss:$0 sm:$0xff] }
 0x14f   :  { %v253_v12 = vadd.f32 %v1007_v11, %v1439_v46  ;;  %v244_v13 = vpop.f32.mrb[9].mxu0  ;;  %1079 = vmatprep.subr.bf16.mxu1 %v1120_v42 }
 0x150   :  { %v245_v14 = vadd.f32 %v1439_v46, %v244_v13  ;;  %v1008_v15 = vpop.f32.mrb[10].mxu0  ;;  %1033 = vmatprep.mubr.bf16.mxu1 %v293_v10 }
 0x151   :  { %v285_v16 = vmax.f32 %v253_v12, 0.0  ;;  %v256_v17 = vadd.f32 %v1008_v15, %v1439_v46  ;;  %v247_v18 = vpop.f32.mrb[11].mxu0  ;;  %1034 = vmatmul.mubr.bf16.gmra.mrb[4].mxu1 %v294_v9 }
 0x152   :  { %v248_v19 = vadd.f32 %v1439_v46, %v247_v18  ;;  %1087 = vmatpush3.bf16.msra.mxu1 %v1120_v42  ;;  %v283_v21 = vmax.f32 %v245_v14, 0.0 }
 0x153   :  { %v286_v20 = vmax.f32 %v256_v17, 0.0  ;;  %1080 = vmatprep.subr.bf16.mxu1 %v1424_v43 }
 0x154   :  { %v284_v22 = vmax.f32 %v248_v19, 0.0 }
 0x155   :  { %v296_v23 = vpack.c.bf16 %v286_v20, %v285_v16 }
 0x156   :  { %v295_v24 = vpack.c.bf16 %v284_v22, %v283_v21  ;;  %v1011_v25 = vpop.f32.mrb[12].mxu0  ;;  %1088 = vmatpush3.bf16.msra.mxu1 %v1424_v43 }
 0x157   :  { %v269_v26 = vadd.f32 %v1011_v25, %v1439_v46  ;;  %v260_v27 = vpop.f32.mrb[13].mxu0  ;;  %1081 = vmatprep.subr.bf16.mxu1 %v1427_v44 }
 0x158   :  { %v261_v28 = vadd.f32 %v1439_v46, %v260_v27  ;;  %v1012_v29 = vpop.f32.mrb[14].mxu0  ;;  %1037 = vmatprep.mubr.bf16.mxu1 %v295_v24 }
 0x159   :  { %v289_v30 = vmax.f32 %v269_v26, 0.0  ;;  %v272_v31 = vadd.f32 %v1012_v29, %v1439_v46  ;;  %v263_v32 = vpop.f32.mrb[15].mxu0  ;;  %1038 = vmatmul.mubr.bf16.gmra.mrb[8].mxu1 %v296_v23 }
 0x15a   :  { %v264_v33 = vadd.f32 %v1439_v46, %v263_v32  ;;  %1089 = vmatpush3.bf16.msra.mxu1 %v1427_v44  ;;  %v287_v35 = vmax.f32 %v261_v28, 0.0 }
 0x15b   :  { %v290_v34 = vmax.f32 %v272_v31, 0.0  ;;  %1082 = vmatprep.subr.bf16.mxu1 %v1431_v45 }
 0x15c   :  { %v288_v36 = vmax.f32 %v264_v33, 0.0 }
 0x15d   :  { %v298_v37 = vpack.c.bf16 %v290_v34, %v289_v30  ;;  %v659_v34 = vlaneseq }
 0x15e   :  { %v297_v38 = vpack.c.bf16 %v288_v36, %v287_v35  ;;  %1090 = vmatpush3.bf16.msra.mxu1 %v1431_v45  ;;  %v1471_v36 = vld [vmem:[%s1816_s6] ss:$0 sm:$0xff]  ;;  %s1316_s6 = smov [#allocation10]  }
 0x15f   :  { %1083 = vmatprep.subr.bf16.mxu1 %v1124_v39  ;;  %v1466_v35 = vand.u32 127, %v659_v34  ;;  %s892_s8 = sshll.u32 %s1316_s6, 4  ;;  %s893_s8 = int_to_ptr.vmem [resolvable:$true] %s892_s8 }
 0x160   :  { %1041 = vmatprep.mubr.bf16.mxu1 %v297_v38  ;;  %s1278_s9 = scalar_lea.vmem %s893_s8, 2048  ;;  %p1283_p5 = scmp.lt.s32.totalorder %s893_s8, %s893_s8 }
 0x161   :  { %1042 = vmatmul.mubr.bf16.gmra.mrb[12].mxu1 %v298_v37  ;;  %vm661_vm0 = vcmp.lt.s32.totalorder %v1466_v35, 4  ;;  %vm662_vm1 = vcmp.eq.s32.totalorder %v1466_v35, 4  ;;  %p1279_p4 = scmp.ne.s32.totalorder %s893_s8, %s1278_s9  ;;  %p1284_p6 = scmp.lt.s32.totalorder %s1278_s9, %s1278_s9 }
 0x162   :  { %1091 = vmatpush3.bf16.msra.mxu1 %v1124_v39 }
 0x163   :  { %1084 = vmatprep.subr.bf16.mxu1 %v1125_v40  ;;  %p1285_p7 = por %p1284_p6, %p1283_p5 }
 0x165   :  { %p1286_p8 = pnand %p1285_p7, %p1279_p4 }
 0x166   :  { %1092 = vmatpush3.bf16.msra.mxu1 %v1125_v40 }
 0x21c   :  { %v1031_v42 = vpop.f32.mrb[0].mxu1 }
 0x21d   :  { %v413_v43 = vadd.f32 %v1031_v42, %v915_v41  ;;  %v404_v44 = vpop.f32.mrb[1].mxu1 }
 0x21e   :  { %v405_v45 = vadd.f32 %v915_v41, %v404_v44  ;;  %v1032_v46 = vpop.f32.mrb[2].mxu1 }
 0x21f   :  { %v416_v47 = vadd.f32 %v1032_v46, %v915_v41  ;;  %v407_v48 = vpop.f32.mrb[3].mxu1  ;;  %v469_v50 = vmax.f32 %v413_v43, 0.0 }
 0x220   :  { %v408_v49 = vadd.f32 %v915_v41, %v407_v48  ;;  %v467_v52 = vmax.f32 %v405_v45, 0.0 }
 0x221   :  { %v470_v51 = vmax.f32 %v416_v47, 0.0 }
 0x222   :  { %v468_v53 = vmax.f32 %v408_v49, 0.0 }
 0x223   :  { %v484_v54 = vpack.c.bf16 %v470_v51, %v469_v50 }
 0x224   :  { %v483_v55 = vpack.c.bf16 %v468_v53, %v467_v52  ;;  %v1035_v56 = vpop.f32.mrb[4].mxu1 }
 0x225   :  { %v429_v57 = vadd.f32 %v1035_v56, %v915_v41  ;;  %v420_v58 = vpop.f32.mrb[5].mxu1 }
 0x226   :  { %v421_v59 = vadd.f32 %v915_v41, %v420_v58  ;;  %v1036_v60 = vpop.f32.mrb[6].mxu1  ;;  %1061 = vmatprep.mubr.bf16.mxu0 %v483_v55 }
 0x227   :  { %v432_v61 = vadd.f32 %v1036_v60, %v915_v41  ;;  %v423_v62 = vpop.f32.mrb[7].mxu1  ;;  %1062 = vmatmul.mubr.bf16.vlgmr.msra.gmra.mrb[16].mxu0 %v484_v54  ;;  %v473_v0 = vmax.f32 %v429_v57, 0.0 }
 0x228   :  { %v424_v63 = vadd.f32 %v915_v41, %v423_v62  ;;  %v471_v2 = vmax.f32 %v421_v59, 0.0 }
 0x229   :  { %v474_v1 = vmax.f32 %v432_v61, 0.0 }
 0x22a   :  { %v472_v3 = vmax.f32 %v424_v63, 0.0 }
 0x22b   :  { %v486_v4 = vpack.c.bf16 %v474_v1, %v473_v0 }
 0x22c   :  { %v485_v5 = vpack.c.bf16 %v472_v3, %v471_v2  ;;  %v1039_v6 = vpop.f32.mrb[8].mxu1 }
 0x22d   :  { %v445_v7 = vadd.f32 %v1039_v6, %v915_v41  ;;  %v436_v8 = vpop.f32.mrb[9].mxu1 }
 0x22e   :  { %v437_v9 = vadd.f32 %v915_v41, %v436_v8  ;;  %v1040_v10 = vpop.f32.mrb[10].mxu1  ;;  %1065 = vmatprep.mubr.bf16.mxu0 %v485_v5 }
 0x22f   :  { %v448_v11 = vadd.f32 %v1040_v10, %v915_v41  ;;  %v439_v12 = vpop.f32.mrb[11].mxu1  ;;  %1066 = vmatmul.mubr.bf16.gmra.mrb[20].mxu0 %v486_v4  ;;  %v477_v14 = vmax.f32 %v445_v7, 0.0 }
 0x230   :  { %v440_v13 = vadd.f32 %v915_v41, %v439_v12  ;;  %v475_v16 = vmax.f32 %v437_v9, 0.0 }
 0x231   :  { %v478_v15 = vmax.f32 %v448_v11, 0.0 }
 0x232   :  { %v476_v17 = vmax.f32 %v440_v13, 0.0 }
 0x233   :  { %v488_v18 = vpack.c.bf16 %v478_v15, %v477_v14 }
 0x234   :  { %v487_v19 = vpack.c.bf16 %v476_v17, %v475_v16  ;;  %v1043_v20 = vpop.f32.mrb[12].mxu1 }
 0x235   :  { %v461_v21 = vadd.f32 %v1043_v20, %v915_v41  ;;  %v452_v22 = vpop.f32.mrb[13].mxu1 }
 0x236   :  { %v453_v23 = vadd.f32 %v915_v41, %v452_v22  ;;  %v1044_v24 = vpop.f32.mrb[14].mxu1  ;;  %1069 = vmatprep.mubr.bf16.mxu1 %v487_v19 }
 0x237   :  { %v464_v25 = vadd.f32 %v1044_v24, %v915_v41  ;;  %v455_v26 = vpop.f32.mrb[15].mxu1  ;;  %1070 = vmatmul.mubr.bf16.vlgmr.msra.gmra.mrb[16].mxu1 %v488_v18  ;;  %v481_v28 = vmax.f32 %v461_v21, 0.0 }
 0x238   :  { %v456_v27 = vadd.f32 %v915_v41, %v455_v26  ;;  %v479_v30 = vmax.f32 %v453_v23, 0.0 }
 0x239   :  { %v482_v29 = vmax.f32 %v464_v25, 0.0 }
 0x23a   :  { %v480_v31 = vmax.f32 %v456_v27, 0.0 }
 0x23b   :  { %v490_v32 = vpack.c.bf16 %v482_v29, %v481_v28 }
 0x23c   :  { %v489_v33 = vpack.c.bf16 %v480_v31, %v479_v30 }
 0x23e   :  { %1073 = vmatprep.mubr.bf16.mxu1 %v489_v33 }
 0x23f   :  { %1074 = vmatmul.mubr.bf16.gmra.mrb[20].mxu1 %v490_v32 }
 0x2fa   :  { %v1063_v37 = vpop.f32.mrb[16].mxu0 }
 0x2fb   :  { %v605_v38 = vadd.f32 %v1063_v37, %v1471_v36  ;;  %v596_v39 = vpop.f32.mrb[17].mxu0 }
 0x2fc   :  { %v597_v40 = vadd.f32 %v1471_v36, %v596_v39  ;;  %v1064_v41 = vpop.f32.mrb[18].mxu0 }
 0x2fd   :  { %v1479_v42 = vsel %vm662_vm1, %v605_v38, 0.0  ;;  %v608_v43 = vadd.f32 %v1064_v41, %v1471_v36  ;;  %v599_v44 = vpop.f32.mrb[19].mxu0  ;;  %v1484_v45 = vsel %vm661_vm0, %v605_v38, -inf }
 0x2fe   :  { %v1488_v46 = vsel %vm662_vm1, %v597_v40, 0.0  ;;  %v600_v47 = vadd.f32 %v1471_v36, %v599_v44  ;;  %683 = vmax.xlane.f32.xlu1 %v1484_v45  ;;  %v1494_v48 = vsel %vm661_vm0, %v597_v40, -inf }
 0x2ff   :  { %v1498_v49 = vsel %vm662_vm1, %v608_v43, 0.0  ;;  %679 = vmax.xlane.f32.xlu0 %v1494_v48  ;;  %v1507_v51 = vsel %vm661_vm0, %v608_v43, -inf }
 0x300   :  { %v1503_v50 = vsel %vm662_vm1, %v600_v47, 0.0  ;;  %v1512_v53 = vsel %vm661_vm0, %v600_v47, -inf }
 0x302   :  { %685 = vmax.xlane.f32.xlu1 %v1507_v51  ;;  %v1067_v52 = vpop.f32.mrb[20].mxu0 }
 0x303   :  { %v621_v54 = vadd.f32 %v1067_v52, %v1471_v36  ;;  %v612_v55 = vpop.f32.mrb[21].mxu0  ;;  %681 = vmax.xlane.f32.xlu0 %v1512_v53 }
 0x304   :  { %v613_v56 = vadd.f32 %v1471_v36, %v612_v55  ;;  %v1068_v57 = vpop.f32.mrb[22].mxu0 }
 0x305   :  { %v1519_v58 = vsel %vm662_vm1, %v621_v54, 0.0  ;;  %v624_v59 = vadd.f32 %v1068_v57, %v1471_v36  ;;  %v615_v60 = vpop.f32.mrb[23].mxu0  ;;  %v1524_v61 = vsel %vm661_vm0, %v621_v54, -inf }
 0x306   :  { %v1528_v62 = vsel %vm662_vm1, %v613_v56, 0.0  ;;  %v616_v63 = vadd.f32 %v1471_v36, %v615_v60  ;;  %v1547_v4 = vsel %vm661_vm0, %v613_v56, -inf }
 0x307   :  { %v1533_v0 = vsel %vm662_vm1, %v624_v59, 0.0  ;;  %691 = vmax.xlane.f32.xlu0 %v1524_v61  ;;  %v1538_v1 = vsel %vm661_vm0, %v624_v59, -inf }
 0x308   :  { %v1542_v2 = vsel %vm662_vm1, %v616_v63, 0.0  ;;  %693 = vmax.xlane.f32.xlu1 %v1538_v1  ;;  %v1553_v7 = vsel %vm661_vm0, %v616_v63, -inf }
 0x30a   :  { %v1071_v3 = vpop.f32.mrb[16].mxu1 }
 0x30b   :  { %v637_v5 = vadd.f32 %v1071_v3, %v1471_v36  ;;  %v628_v6 = vpop.f32.mrb[17].mxu1  ;;  %687 = vmax.xlane.f32.xlu0 %v1547_v4 }
 0x30c   :  { %v629_v8 = vadd.f32 %v1471_v36, %v628_v6  ;;  %v1072_v9 = vpop.f32.mrb[18].mxu1  ;;  %689 = vmax.xlane.f32.xlu1 %v1553_v7 }
 0x30d   :  { %v1559_v10 = vsel %vm662_vm1, %v637_v5, 0.0  ;;  %v640_v11 = vadd.f32 %v1072_v9, %v1471_v36  ;;  %v631_v12 = vpop.f32.mrb[19].mxu1  ;;  %v1564_v13 = vsel %vm661_vm0, %v637_v5, -inf }
 0x30e   :  { %v1568_v14 = vsel %vm662_vm1, %v629_v8, 0.0  ;;  %v632_v15 = vadd.f32 %v1471_v36, %v631_v12  ;;  %v1587_v20 = vsel %vm661_vm0, %v629_v8, -inf }
 0x30f   :  { %v1573_v16 = vsel %vm662_vm1, %v640_v11, 0.0  ;;  %699 = vmax.xlane.f32.xlu0 %v1564_v13  ;;  %v1578_v17 = vsel %vm661_vm0, %v640_v11, -inf }
 0x310   :  { %v1582_v18 = vsel %vm662_vm1, %v632_v15, 0.0  ;;  %701 = vmax.xlane.f32.xlu1 %v1578_v17  ;;  %v1593_v23 = vsel %vm661_vm0, %v632_v15, -inf }
 0x312   :  { %v1075_v19 = vpop.f32.mrb[20].mxu1 }
 0x313   :  { %v653_v21 = vadd.f32 %v1075_v19, %v1471_v36  ;;  %v644_v22 = vpop.f32.mrb[21].mxu1  ;;  %695 = vmax.xlane.f32.xlu0 %v1587_v20 }
 0x314   :  { %v645_v24 = vadd.f32 %v1471_v36, %v644_v22  ;;  %v1076_v25 = vpop.f32.mrb[22].mxu1  ;;  %697 = vmax.xlane.f32.xlu1 %v1593_v23 }
 0x315   :  { %v1599_v26 = vsel %vm662_vm1, %v653_v21, 0.0  ;;  %v656_v27 = vadd.f32 %v1076_v25, %v1471_v36  ;;  %v647_v28 = vpop.f32.mrb[23].mxu1 }
 0x316   :  { %v1604_v29 = vsel %vm662_vm1, %v645_v24, 0.0  ;;  %v648_v30 = vadd.f32 %v1471_v36, %v647_v28  ;;  %v1609_v31 = vsel %vm661_vm0, %v645_v24, -inf  ;;  %v1627_v36 = vsel %vm661_vm0, %v653_v21, -inf }
 0x317   :  { %v1613_v32 = vsel %vm662_vm1, %v656_v27, 0.0  ;;  %703 = vmax.xlane.f32.xlu0 %v1609_v31  ;;  %v1632_v37 = vsel %vm661_vm0, %v656_v27, -inf }
 0x318   :  { %v1618_v33 = vsel %vm662_vm1, %v648_v30, 0.0  ;;  %v1622_v34 = vsel %vm661_vm0, %v648_v30, -inf }
 0x319   :  { %705 = vmax.xlane.f32.xlu1 %v1622_v34 }
 0x31b   :  { %707 = vmax.xlane.f32.xlu0 %v1627_v36 }
 0x31d   :  { %709 = vmax.xlane.f32.xlu1 %v1632_v37 }
 0x38b   :  { %v684_v38 = vpop.xlane.xlu1 %683 }
 0x38c   :  { %v713_v39 = vsub.f32 %v1484_v45, %v684_v38  ;;  %v680_v40 = vpop.xlane.xlu0 %679 }
 0x38d   :  { %v711_v41 = vsub.f32 %v1494_v48, %v680_v40 }
 0x38e   :  { %v731_v43 = vmul.f32 1.442695, %v713_v39 }
 0x38f   :  { %v727_v44 = vmul.f32 1.442695, %v711_v41  ;;  %v686_v47 = vpop.xlane.xlu1 %685 }
 0x390   :  { %1126 = vpow2.f32 %v731_v43  ;;  %v714_v52 = vsub.f32 %v1507_v51, %v686_v47  ;;  %v682_v54 = vpop.xlane.xlu0 %681 }
 0x391   :  { %v712_v55 = vsub.f32 %v1512_v53, %v682_v54  ;;  %1128 = vpow2.f32 %v727_v44 }
 0x392   :  { %v733_v56 = vmul.f32 1.442695, %v714_v52 }
 0x393   :  { %v729_v57 = vmul.f32 1.442695, %v712_v55 }
 0x394   :  { %1130 = vpow2.f32 %v733_v56  ;;  %v692_v59 = vpop.xlane.xlu0 %691 }
 0x395   :  { %v717_v60 = vsub.f32 %v1524_v61, %v692_v59  ;;  %v694_v45 = vpop.xlane.xlu1 %693  ;;  %1132 = vpow2.f32 %v729_v57 }
 0x396   :  { %v718_v48 = vsub.f32 %v1538_v1, %v694_v45 }
 0x397   :  { %v739_v63 = vmul.f32 1.442695, %v717_v60 }
 0x398   :  { %v741_v3 = vmul.f32 1.442695, %v718_v48  ;;  %v688_v5 = vpop.xlane.xlu0 %687 }
 0x399   :  { %1134 = vpow2.f32 %v739_v63  ;;  %v715_v51 = vsub.f32 %v1547_v4, %v688_v5  ;;  %v690_v6 = vpop.xlane.xlu1 %689 }
 0x39a   :  { %v1127_v8 = vpop.eup %1126  ;;  %1136 = vpow2.f32 %v741_v3  ;;  %v716_v53 = vsub.f32 %v1553_v7, %v690_v6 }
 0x39b   :  { %v735_v9 = vmul.f32 1.442695, %v715_v51  ;;  %v1645_v11 = vsel %vm661_vm0, %v1127_v8, 0.0  ;;  %v1129_v61 = vpop.eup %1128 }
 0x39c   :  { %v737_v12 = vmul.f32 1.442695, %v716_v53  ;;  %779 = vadd.xlane.f32.xlu0 %v1645_v11  ;;  %v700_v1 = vpop.xlane.xlu0 %699  ;;  %v1656_v24 = vsel %vm661_vm0, %v1129_v61, 0.0 }
 0x39d   :  { %1138 = vpow2.f32 %v735_v9  ;;  %v721_v15 = vsub.f32 %v1564_v13, %v700_v1  ;;  %v702_v19 = vpop.xlane.xlu1 %701 }
 0x39e   :  { %v1131_v4 = vpop.eup %1130  ;;  %1140 = vpow2.f32 %v737_v12  ;;  %v722_v21 = vsub.f32 %v1578_v17, %v702_v19 }
 0x39f   :  { %v747_v22 = vmul.f32 1.442695, %v721_v15  ;;  %v1652_v7 = vsel %vm661_vm0, %v1131_v4, 0.0  ;;  %v1133_v25 = vpop.eup %1132 }
 0x3a0   :  { %v749_v27 = vmul.f32 1.442695, %v722_v21  ;;  %781 = vadd.xlane.f32.xlu1 %v1652_v7  ;;  %775 = vadd.xlane.f32.xlu0 %v1656_v24  ;;  %v696_v13 = vpop.xlane.xlu0 %695  ;;  %v1664_v40 = vsel %vm661_vm0, %v1133_v25, 0.0 }
 0x3a1   :  { %1142 = vpow2.f32 %v747_v22  ;;  %v719_v28 = vsub.f32 %v1587_v20, %v696_v13  ;;  %v698_v17 = vpop.xlane.xlu1 %697 }
 0x3a2   :  { %1144 = vpow2.f32 %v749_v27  ;;  %v720_v30 = vsub.f32 %v1593_v23, %v698_v17 }
 0x3a3   :  { %v1135_v38 = vpop.eup %1134  ;;  %v743_v39 = vmul.f32 1.442695, %v719_v28 }
 0x3a4   :  { %v1137_v41 = vpop.eup %1136  ;;  %v745_v43 = vmul.f32 1.442695, %v720_v30  ;;  %777 = vadd.xlane.f32.xlu1 %v1664_v40  ;;  %v704_v44 = vpop.xlane.xlu0 %703  ;;  %v1669_v47 = vsel %vm661_vm0, %v1135_v38, 0.0 }
 0x3a5   :  { %1146 = vpow2.f32 %v743_v39  ;;  %v723_v20 = vsub.f32 %v1609_v31, %v704_v44  ;;  %787 = vadd.xlane.f32.xlu0 %v1669_v47  ;;  %v1676_v56 = vsel %vm661_vm0, %v1137_v41, 0.0 }
 0x3a6   :  { %1148 = vpow2.f32 %v745_v43  ;;  %v706_v23 = vpop.xlane.xlu1 %705 }
 0x3a7   :  { %v1139_v52 = vpop.eup %1138  ;;  %v751_v54 = vmul.f32 1.442695, %v723_v20  ;;  %v724_v55 = vsub.f32 %v1622_v34, %v706_v23 }
 0x3a8   :  { %v1141_v57 = vpop.eup %1140  ;;  %789 = vadd.xlane.f32.xlu1 %v1676_v56  ;;  %v708_v59 = vpop.xlane.xlu0 %707  ;;  %v1681_v60 = vsel %vm661_vm0, %v1139_v52, 0.0 }
 0x3a9   :  { %1150 = vpow2.f32 %v751_v54  ;;  %v753_v31 = vmul.f32 1.442695, %v724_v55  ;;  %v725_v45 = vsub.f32 %v1627_v36, %v708_v59  ;;  %783 = vadd.xlane.f32.xlu0 %v1681_v60  ;;  %v1688_v5 = vsel %vm661_vm0, %v1141_v57, 0.0 }
 0x3aa   :  { %v710_v48 = vpop.xlane.xlu1 %709 }
 0x3ab   :  { %v1143_v34 = vpop.eup %1142  ;;  %1152 = vpow2.f32 %v753_v31  ;;  %v755_v63 = vmul.f32 1.442695, %v725_v45  ;;  %v726_v3 = vsub.f32 %v1632_v37, %v710_v48 }
 0x3ac   :  { %v1145_v51 = vpop.eup %1144  ;;  %785 = vadd.xlane.f32.xlu1 %v1688_v5  ;;  %v1693_v6 = vsel %vm661_vm0, %v1143_v34, 0.0 }
 0x3ad   :  { %1154 = vpow2.f32 %v755_v63  ;;  %v757_v36 = vmul.f32 1.442695, %v726_v3  ;;  %795 = vadd.xlane.f32.xlu0 %v1693_v6  ;;  %v1698_v37 = vsel %vm661_vm0, %v1145_v51, 0.0 }
 0x3af   :  { %v1147_v8 = vpop.eup %1146  ;;  %1156 = vpow2.f32 %v757_v36 }
 0x3b0   :  { %v1149_v53 = vpop.eup %1148  ;;  %797 = vadd.xlane.f32.xlu1 %v1698_v37  ;;  %v1703_v9 = vsel %vm661_vm0, %v1147_v8, 0.0 }
 0x3b1   :  { %791 = vadd.xlane.f32.xlu0 %v1703_v9  ;;  %v1708_v12 = vsel %vm661_vm0, %v1149_v53, 0.0 }
 0x3b3   :  { %v1151_v61 = vpop.eup %1150 }
 0x3b4   :  { %793 = vadd.xlane.f32.xlu1 %v1708_v12  ;;  %v1713_v1 = vsel %vm661_vm0, %v1151_v61, 0.0 }
 0x3b5   :  { %v1153_v15 = vpop.eup %1152  ;;  %799 = vadd.xlane.f32.xlu0 %v1713_v1 }
 0x3b6   :  { %v1718_v19 = vsel %vm661_vm0, %v1153_v15, 0.0 }
 0x3b7   :  { %v1155_v4 = vpop.eup %1154 }
 0x3b8   :  { %801 = vadd.xlane.f32.xlu1 %v1718_v19  ;;  %v1723_v21 = vsel %vm661_vm0, %v1155_v4, 0.0 }
 0x3b9   :  { %v1157_v22 = vpop.eup %1156  ;;  %803 = vadd.xlane.f32.xlu0 %v1723_v21 }
 0x3ba   :  { %v1728_v25 = vsel %vm661_vm0, %v1157_v22, 0.0 }
 0x3bc   :  { %805 = vadd.xlane.f32.xlu1 %v1728_v25 }
 0x429   :  { %v780_v27 = vpop.xlane.xlu0 %779 }
 0x42a   :  { %1158 = vrcp.f32 %v780_v27 }
 0x42d   :  { %v782_v13 = vpop.xlane.xlu1 %781  ;;  %v776_v28 = vpop.xlane.xlu0 %775 }
 0x42e   :  { %1160 = vrcp.f32 %v782_v13 }
 0x42f   :  { %1162 = vrcp.f32 %v776_v28 }
 0x431   :  { %v778_v17 = vpop.xlane.xlu1 %777 }
 0x432   :  { %1164 = vrcp.f32 %v778_v17  ;;  %v788_v30 = vpop.xlane.xlu0 %787 }
 0x433   :  { %1166 = vrcp.f32 %v788_v30 }
 0x434   :  { %v1159_v38 = vpop.eup %1158 }
 0x435   :  { %v825_v39 = vmul.f32 %v1159_v38, %v1645_v11  ;;  %v790_v41 = vpop.xlane.xlu1 %789 }
 0x436   :  { %1168 = vrcp.f32 %v790_v41  ;;  %v784_v43 = vpop.xlane.xlu0 %783 }
 0x437   :  { %v857_v44 = vsel %vm661_vm0, %v825_v39, %v1479_v42  ;;  %1170 = vrcp.f32 %v784_v43 }
 0x438   :  { %v1161_v20 = vpop.eup %1160  ;;  %873 = vst [vmem:[#allocation10 + $0x10] sm:$0xff] %v857_v44 }
 0x439   :  { %v1163_v23 = vpop.eup %1162  ;;  %v826_v52 = vmul.f32 %v1161_v20, %v1652_v7  ;;  %v786_v54 = vpop.xlane.xlu1 %785 }
 0x43a   :  { %v823_v55 = vmul.f32 %v1163_v23, %v1656_v24  ;;  %1172 = vrcp.f32 %v786_v54  ;;  %v796_v57 = vpop.xlane.xlu0 %795 }
 0x43b   :  { %v858_v11 = vsel %vm661_vm0, %v826_v52, %v1498_v49  ;;  %1174 = vrcp.f32 %v796_v57 }
 0x43c   :  { %v1165_v59 = vpop.eup %1164  ;;  %874 = vst [vmem:[#allocation10 + $0x18] sm:$0xff] %v858_v11  ;;  %v855_v42 = vsel %vm661_vm0, %v823_v55, %v1488_v46 }
 0x43d   :  { %v1167_v31 = vpop.eup %1166  ;;  %871 = vst [vmem:[#allocation10] sm:$0xff] %v855_v42  ;;  %v824_v7 = vmul.f32 %v1165_v59, %v1664_v40  ;;  %v798_v45 = vpop.xlane.xlu1 %797 }
 0x43e   :  { %v829_v24 = vmul.f32 %v1167_v31, %v1669_v47  ;;  %1176 = vrcp.f32 %v798_v45  ;;  %v792_v48 = vpop.xlane.xlu0 %791 }
 0x43f   :  { %v856_v49 = vsel %vm661_vm0, %v824_v7, %v1503_v50  ;;  %1178 = vrcp.f32 %v792_v48 }
 0x440   :  { %v1169_v34 = vpop.eup %1168  ;;  %872 = vst [vmem:[#allocation10 + $0x8] sm:$0xff] %v856_v49  ;;  %v861_v46 = vsel %vm661_vm0, %v829_v24, %v1519_v58 }
 0x441   :  { %v1171_v63 = vpop.eup %1170  ;;  %877 = vst [vmem:[#allocation10 + $0x30] sm:$0xff] %v861_v46  ;;  %v830_v40 = vmul.f32 %v1169_v34, %v1676_v56  ;;  %v794_v3 = vpop.xlane.xlu1 %793 }
 0x442   :  { %v827_v47 = vmul.f32 %v1171_v63, %v1681_v60  ;;  %1180 = vrcp.f32 %v794_v3  ;;  %v800_v51 = vpop.xlane.xlu0 %799 }
 0x443   :  { %v862_v50 = vsel %vm661_vm0, %v830_v40, %v1533_v0  ;;  %1182 = vrcp.f32 %v800_v51 }
 0x444   :  { %v1173_v36 = vpop.eup %1172  ;;  %878 = vst [vmem:[#allocation10 + $0x38] sm:$0xff] %v862_v50  ;;  %v859_v58 = vsel %vm661_vm0, %v827_v47, %v1528_v62 }
 0x445   :  { %v1175_v8 = vpop.eup %1174  ;;  %875 = vst [vmem:[#allocation10 + $0x20] sm:$0xff] %v859_v58  ;;  %v828_v56 = vmul.f32 %v1173_v36, %v1688_v5  ;;  %v802_v53 = vpop.xlane.xlu1 %801 }
 0x446   :  { %v833_v60 = vmul.f32 %v1175_v8, %v1693_v6  ;;  %1184 = vrcp.f32 %v802_v53  ;;  %v804_v61 = vpop.xlane.xlu0 %803 }
 0x447   :  { %v860_v0 = vsel %vm661_vm0, %v828_v56, %v1542_v2  ;;  %1186 = vrcp.f32 %v804_v61 }
 0x448   :  { %v1177_v15 = vpop.eup %1176  ;;  %876 = vst [vmem:[#allocation10 + $0x28] sm:$0xff] %v860_v0  ;;  %v865_v62 = vsel %vm661_vm0, %v833_v60, %v1559_v10 }
 0x449   :  { %v1179_v4 = vpop.eup %1178  ;;  %881 = vst [vmem:[#allocation10 + $0x50] sm:$0xff] %v865_v62  ;;  %v834_v5 = vmul.f32 %v1177_v15, %v1698_v37  ;;  %v806_v22 = vpop.xlane.xlu1 %805 }
 0x44a   :  { %v831_v6 = vmul.f32 %v1179_v4, %v1703_v9  ;;  %1188 = vrcp.f32 %v806_v22 }
 0x44b   :  { %v866_v27 = vsel %vm661_vm0, %v834_v5, %v1573_v16 }
 0x44c   :  { %v1181_v2 = vpop.eup %1180  ;;  %882 = vst [vmem:[#allocation10 + $0x58] sm:$0xff] %v866_v27  ;;  %v863_v13 = vsel %vm661_vm0, %v831_v6, %v1568_v14 }
 0x44d   :  { %v1183_v28 = vpop.eup %1182  ;;  %879 = vst [vmem:[#allocation10 + $0x40] sm:$0xff] %v863_v13  ;;  %v832_v10 = vmul.f32 %v1181_v2, %v1708_v12 }
 0x44e   :  { %v835_v37 = vmul.f32 %v1183_v28, %v1713_v1 }
 0x44f   :  { %v864_v9 = vsel %vm661_vm0, %v832_v10, %v1582_v18 }
 0x450   :  { %v1185_v17 = vpop.eup %1184  ;;  %880 = vst [vmem:[#allocation10 + $0x48] sm:$0xff] %v864_v9  ;;  %v867_v16 = vsel %vm661_vm0, %v835_v37, %v1604_v29 }
 0x451   :  { %v1187_v30 = vpop.eup %1186  ;;  %883 = vst [vmem:[#allocation10 + $0x60] sm:$0xff] %v867_v16  ;;  %v836_v14 = vmul.f32 %v1185_v17, %v1718_v19 }
 0x452   :  { %v837_v38 = vmul.f32 %v1187_v30, %v1723_v21 }
 0x453   :  { %v868_v12 = vsel %vm661_vm0, %v836_v14, %v1618_v33 }
 0x454   :  { %v1189_v1 = vpop.eup %1188  ;;  %884 = vst [vmem:[#allocation10 + $0x68] sm:$0xff] %v868_v12  ;;  %v869_v18 = vsel %vm661_vm0, %v837_v38, %v1599_v26 }
 0x455   :  { %885 = vst [vmem:[#allocation10 + $0x70] sm:$0xff] %v869_v18  ;;  %v838_v29 = vmul.f32 %v1189_v1, %v1728_v25 }
 0x457   :  { %v870_v19 = vsel %vm661_vm0, %v838_v29, %v1613_v32 }
 0x458   :  { %886 = vst [vmem:[#allocation10 + $0x78] sm:$0xff] %v870_v19 }
 0x459   :  { %1289 = shalt.err (!%p1286_p8)
}
 0x45a   :  { %s1290_s14 = scalar_lea.hbm %s1817_s7, 2048 }
 0x45b   :  { %p1291_p9 = scmp.ne.s32.totalorder %s1817_s7, %s1290_s14  ;;  %p1294_p10 = scmp.lt.u32.totalorder %s1290_s14, %s1817_s7 }
 0x45d   :  { %p1296_p11 = pnand %p1294_p10, %p1291_p9 }
 0x45f   :  { %1299 = shalt.err (!%p1296_p11)
}
 0x460   :  { %898 = dma.vmem_to_hbm [thread:$0]  %s893_s8, 2048, %s1817_s7, [#allocation4], %s1312_s1, %s1312_s1, %s1313_s25  }
 0x461   :  { %1306 = dma.done.wait [#allocation4], 2048  }
 0x462   :  { %1307 = vsyncadd [#allocation4], 4294965248 }
 0x463   :  { %902 = vsyncpa [#allocation3], 1 }
 0x464   :  { %903 = vsyncpa [#allocation6], 1 }
 0x465   :  { %904 = vsyncpa [#allocation9], 1 }
 0x466   :  { %905 = vsyncpa [#allocation4], 1 }

</bundles_post_ra>
